<compile_context>
chip_gen: v7x
topology: tpu7x:2x2x1
jax: 0.10.0
libtpu: 0.0.40
codegen_flags: <defaults>
</compile_context>

<pallas_src>
import jax
import jax.numpy as jnp
from jax.experimental import pallas as pl
from jax.experimental.pallas import tpu as pltpu


def _round_up(x, m):
    return (x + m - 1) // m * m


# ---------------------------------------------------------------------------
# Kernels
# ---------------------------------------------------------------------------
def _iclassifier_resident_kernel(x_ref, w1_ref, b1_ref, w2_ref, b2_ref,
                                 feats_ref, c_ref):
    """W1 fully VMEM-resident: single grid axis over row tiles, no K loop."""
    # x arrives as f32 straight from HBM; cast to bf16 on-chip for the MXU.
    x_bf = x_ref[...].astype(jnp.bfloat16)
    w1_bf = w1_ref[...].astype(jnp.bfloat16)
    feats_f32 = jnp.maximum(
        jnp.dot(x_bf, w1_bf, preferred_element_type=jnp.float32) + b1_ref[...],
        0.0)
    feats_ref[...] = feats_f32.astype(feats_ref.dtype)
    c = jnp.dot(feats_f32.astype(jnp.bfloat16),
                w2_ref[...].astype(jnp.bfloat16),
                preferred_element_type=jnp.float32) + b2_ref[...]
    c_ref[...] = c.astype(c_ref.dtype)


def _iclassifier_ktiled_kernel(x_ref, w1_ref, b1_ref, w2_ref, b2_ref,
                               feats_ref, c_ref, acc_ref):
    """Fallback when W1 is too large for VMEM: stream W1 over a K grid axis."""
    k = pl.program_id(1)

    @pl.when(k == 0)
    def _():
        acc_ref[...] = jnp.zeros_like(acc_ref)

    acc_ref[...] += jnp.dot(x_ref[...].astype(jnp.bfloat16),
                            w1_ref[...].astype(jnp.bfloat16),
                            preferred_element_type=jnp.float32)

    @pl.when(k == pl.num_programs(1) - 1)
    def _():
        feats_f32 = jnp.maximum(acc_ref[...] + b1_ref[...], 0.0)
        feats_ref[...] = feats_f32.astype(feats_ref.dtype)
        c = jnp.dot(feats_f32.astype(jnp.bfloat16),
                    w2_ref[...].astype(jnp.bfloat16),
                    preferred_element_type=jnp.float32) + b2_ref[...]
        c_ref[...] = c.astype(c_ref.dtype)


# ---------------------------------------------------------------------------
# Wrapper
# ---------------------------------------------------------------------------
def iclassifier_forward(x, w1, b1, w2, b2, *, force_tk=None):
    """Fused IClassifier forward.

    Args:
      x:  (N, C, H, W) float32 bag of instances.
      w1: (C*H*W, feature_size) extractor weight (transposed vs torch).
      b1: (feature_size,) extractor bias.
      w2: (feature_size, n_classes) fc weight (transposed vs torch).
      b2: (n_classes,) fc bias.
      force_tk: force the K-tiled fallback with this K tile (testing only).
    Returns:
      (feats, c) float32 with shapes (N, feature_size), (N, n_classes).
    """
    N = x.shape[0]
    d_in = w1.shape[0]
    F = w1.shape[1]
    C = w2.shape[1]

    x_flat = x.reshape(N, -1).astype(jnp.float32)     # torch .view(N, -1)
    assert x_flat.shape[1] == d_in

    f_pad = _round_up(F, 128)                          # lane-dense feats
    c_pad = _round_up(C, 128)                          # lane-dense logits

    # Path selection: keep W1 resident in VMEM when it fits comfortably.
    resident = (force_tk is None) and (d_in * f_pad * 4 <= 8 * 1024 * 1024)

    if resident:
        x_cols = d_in
    else:
        tk = force_tk if force_tk is not None else 2048
        tk = min(_round_up(tk, 128), _round_up(d_in, 128))
        k_pad = _round_up(d_in, tk)
        kt = k_pad // tk
        x_cols = tk

    # Row tiling: >= 2 tiles whenever possible so v7x's two TensorCores both
    # get work; 16-row alignment for clean bf16 vreg tiles; clamp so the
    # double-buffered f32 x tiles stay under ~16 MiB of VMEM.
    if N <= 512:
        tile_n = min(256, max(16, _round_up((N + 1) // 2, 16)))
    else:
        tile_n = 512
    max_rows = max(16, ((16 * 1024 * 1024) // (8 * x_cols)) // 16 * 16)
    tile_n = min(tile_n, max_rows)
    n_pad = _round_up(N, tile_n)
    nt = n_pad // tile_n

    # Small, read-once operands (f32; biases stay f32 in the epilogue).
    b1_p = jnp.pad(b1.astype(jnp.float32), (0, f_pad - F)).reshape(1, f_pad)
    b2_p = jnp.pad(b2.astype(jnp.float32), (0, c_pad - C)).reshape(1, c_pad)
    w2_p = jnp.pad(w2.astype(jnp.float32), ((0, f_pad - F), (0, c_pad - C)))

    out_shape = (jax.ShapeDtypeStruct((n_pad, f_pad), jnp.float32),
                 jax.ShapeDtypeStruct((n_pad, c_pad), jnp.float32))

    if resident:
        # x: row-pad only when strictly needed (no dtype cast, no K pad).
        x_in = x_flat if n_pad == N else jnp.pad(x_flat,
                                                 ((0, n_pad - N), (0, 0)))
        # W1 stays f32 and is read from HBM exactly once (constant index_map);
        # the bf16 cast happens on-chip.
        w1_in = w1.astype(jnp.float32)
        if f_pad != F:
            w1_in = jnp.pad(w1_in, ((0, 0), (0, f_pad - F)))

        flops = 2 * n_pad * d_in * f_pad + 2 * n_pad * f_pad * c_pad
        bytes_accessed = (n_pad * d_in * 4 + d_in * f_pad * 4
                          + f_pad * c_pad * 4 + (f_pad + c_pad) * 4
                          + n_pad * (f_pad + c_pad) * 4)
        vmem_need = (2 * tile_n * d_in * 4        # x (double buffered, f32)
                     + 2 * d_in * f_pad * 4       # W1 (resident, 2x budget)
                     + 2 * f_pad * c_pad * 4      # W2
                     + 2 * tile_n * f_pad * 4     # feats out
                     + 2 * tile_n * c_pad * 4     # c out
                     + 4 * (f_pad + c_pad) * 4)   # biases
        vmem_limit = int(min(48 * 1024 * 1024,
                             max(32 * 1024 * 1024, 2 * vmem_need)))

        feats_p, c_p = pl.pallas_call(
            _iclassifier_resident_kernel,
            out_shape=out_shape,
            grid=(nt,),
            in_specs=[
                pl.BlockSpec((tile_n, d_in), lambda i: (i, 0)),   # x row tile
                pl.BlockSpec((d_in, f_pad), lambda i: (0, 0)),    # W1 resident
                pl.BlockSpec((1, f_pad), lambda i: (0, 0)),       # b1
                pl.BlockSpec((f_pad, c_pad), lambda i: (0, 0)),   # W2 resident
                pl.BlockSpec((1, c_pad), lambda i: (0, 0)),       # b2
            ],
            out_specs=(
                pl.BlockSpec((tile_n, f_pad), lambda i: (i, 0)),
                pl.BlockSpec((tile_n, c_pad), lambda i: (i, 0)),
            ),
            compiler_params=pltpu.CompilerParams(
                dimension_semantics=("parallel",),
                vmem_limit_bytes=vmem_limit),
            cost_estimate=pl.CostEstimate(
                flops=flops, transcendentals=0,
                bytes_accessed=bytes_accessed),
        )(x_in, w1_in, b1_p, w2_p, b2_p)
    else:
        # K-tiled fallback (very large d_in): W1 streamed in bf16 (halves the
        # nt-times re-streamed HBM traffic); x stays f32, cast on-chip.
        # TODO(synk): the wrapper K-pad of x could be avoided by masking the
        # last K tile in-kernel; it only triggers when d_in % tk != 0.
        x_in = x_flat
        if n_pad != N or k_pad != d_in:
            x_in = jnp.pad(x_in, ((0, n_pad - N), (0, k_pad - d_in)))
        w1_in = jnp.pad(w1.astype(jnp.bfloat16),
                        ((0, k_pad - d_in), (0, f_pad - F)))

        flops = 2 * n_pad * k_pad * f_pad + 2 * n_pad * f_pad * c_pad
        bytes_accessed = (n_pad * k_pad * 4
                          + nt * k_pad * f_pad * 2       # W1 re-streamed nt x
                          + f_pad * c_pad * 4 + (f_pad + c_pad) * 4
                          + n_pad * (f_pad + c_pad) * 4)
        vmem_need = (2 * tile_n * tk * 4 + 2 * tk * f_pad * 2
                     + 2 * f_pad * c_pad * 4
                     + 2 * tile_n * f_pad * 4 + 2 * tile_n * c_pad * 4
                     + tile_n * f_pad * 4                # acc scratch
                     + 4 * (f_pad + c_pad) * 4)
        vmem_limit = int(min(48 * 1024 * 1024,
                             max(32 * 1024 * 1024, 2 * vmem_need)))

        feats_p, c_p = pl.pallas_call(
            _iclassifier_ktiled_kernel,
            out_shape=out_shape,
            grid=(nt, kt),
            in_specs=[
                pl.BlockSpec((tile_n, tk), lambda i, k: (i, k)),    # x tile
                pl.BlockSpec((tk, f_pad), lambda i, k: (k, 0)),     # W1 K-tile
                pl.BlockSpec((1, f_pad), lambda i, k: (0, 0)),      # b1
                pl.BlockSpec((f_pad, c_pad), lambda i, k: (0, 0)),  # W2
                pl.BlockSpec((1, c_pad), lambda i, k: (0, 0)),      # b2
            ],
            out_specs=(
                pl.BlockSpec((tile_n, f_pad), lambda i, k: (i, 0)),
                pl.BlockSpec((tile_n, c_pad), lambda i, k: (i, 0)),
            ),
            scratch_shapes=[pltpu.VMEM((tile_n, f_pad), jnp.float32)],
            compiler_params=pltpu.CompilerParams(
                dimension_semantics=("parallel", "arbitrary"),
                vmem_limit_bytes=vmem_limit),
            cost_estimate=pl.CostEstimate(
                flops=flops, transcendentals=0,
                bytes_accessed=bytes_accessed),
        )(x_in, w1_in, b1_p, w2_p, b2_p)

    # Trim padding only when actually present (each slice is an extra HBM
    # pass; a fused consumer could take the padded layout directly).
    feats = feats_p if (n_pad == N and f_pad == F) else feats_p[:N, :F]
    c = c_p if (n_pad == N and c_pad == C) else c_p[:N, :C]
    return feats, c


if __name__ == "__main__":
    # Bag of N instances, NCHW, consistent with the module's forward.
    N, C, H, W = 2, 4, 16, 16
    feature_size = 32
    n_classes = 4
    d_in = C * H * W

    key = jax.random.PRNGKey(0)
    kx, kw1, kb1, kw2, kb2, kx2 = jax.random.split(key, 6)

    x = jax.random.normal(kx, (N, C, H, W), dtype=jnp.float32)
    # Deterministic synthetic parameters (no checkpoint loading).
    w1 = jax.random.normal(kw1, (d_in, feature_size), dtype=jnp.float32) * 0.02
    b1 = jax.random.normal(kb1, (feature_size,), dtype=jnp.float32) * 0.02
    w2 = jax.random.normal(kw2, (feature_size, n_classes),
                           dtype=jnp.float32) * 0.02
    b2 = jax.random.normal(kb2, (n_classes,), dtype=jnp.float32) * 0.02

    def ref(x_):
        n = x_.shape[0]
        x_bf = x_.reshape(n, -1).astype(jnp.bfloat16)
        f_ = jnp.maximum(
            jnp.dot(x_bf, w1.astype(jnp.bfloat16),
                    preferred_element_type=jnp.float32) + b1, 0.0)
        c_ = jnp.dot(f_.astype(jnp.bfloat16), w2.astype(jnp.bfloat16),
                     preferred_element_type=jnp.float32) + b2
        return f_, c_

    # 1) Default (W1-resident) path.
    feats, c = iclassifier_forward(x, w1, b1, w2, b2)
    jax.block_until_ready((feats, c))
    fr, cr = ref(x)
    assert feats.shape == (N, feature_size) and c.shape == (N, n_classes)
    assert jnp.allclose(feats, fr, atol=2e-2, rtol=2e-2)
    assert jnp.allclose(c, cr, atol=2e-2, rtol=2e-2)

    # 2) K-tiled fallback path (forced small tk) with a multi-row-tile bag.
    x2 = jax.random.normal(kx2, (40, C, H, W), dtype=jnp.float32)
    f2, c2 = iclassifier_forward(x2, w1, b1, w2, b2, force_tk=256)
    jax.block_until_ready((f2, c2))
    fr2, cr2 = ref(x2)
    assert f2.shape == (40, feature_size) and c2.shape == (40, n_classes)
    assert jnp.allclose(f2, fr2, atol=2e-2, rtol=2e-2)
    assert jnp.allclose(c2, cr2, atol=2e-2, rtol=2e-2)

    print("KERNEL_OK")
</pallas_src>

<mosaic_0001>
module attributes {stable_mosaic.version = 11 : i64} {
  func.func @_iclassifier_resident_kernel(%arg0: i32, %arg1: memref<16x1024xf32, #tpu.memory_space<vmem>>, %arg2: memref<1024x128xf32, #tpu.memory_space<vmem>>, %arg3: memref<1x128xf32, #tpu.memory_space<vmem>>, %arg4: memref<128x128xf32, #tpu.memory_space<vmem>>, %arg5: memref<1x128xf32, #tpu.memory_space<vmem>>, %arg6: memref<16x128xf32, #tpu.memory_space<vmem>>, %arg7: memref<16x128xf32, #tpu.memory_space<vmem>>) attributes {dimension_semantics = [#tpu.dimension_semantics<parallel>], iteration_bounds = array<i64: 1>, scalar_prefetch = 0 : i64, scratch_operands = 0 : i64, tpu.core_type = #tpu.core_type<tc>, window_params = [{transform_indices = @transform_0, window_bounds = array<i64: 16, 1024>}, {pipeline_mode = #tpu.pipeline_mode<synchronous>, transform_indices = @transform_1, window_bounds = array<i64: 1024, 128>}, {pipeline_mode = #tpu.pipeline_mode<synchronous>, transform_indices = @transform_2, window_bounds = array<i64: 1, 128>}, {pipeline_mode = #tpu.pipeline_mode<synchronous>, transform_indices = @transform_3, window_bounds = array<i64: 128, 128>}, {pipeline_mode = #tpu.pipeline_mode<synchronous>, transform_indices = @transform_4, window_bounds = array<i64: 1, 128>}, {transform_indices = @transform_5, window_bounds = array<i64: 16, 128>}, {transform_indices = @transform_6, window_bounds = array<i64: 16, 128>}]} {
    %c0 = arith.constant 0 : index
    %c0_0 = arith.constant 0 : index
    %0 = vector.load %arg1[%c0, %c0_0] : memref<16x1024xf32, #tpu.memory_space<vmem>>, vector<16x1024xf32>
    %1 = arith.truncf %0 : vector<16x1024xf32> to vector<16x1024xbf16>
    %c0_1 = arith.constant 0 : index
    %c0_2 = arith.constant 0 : index
    %2 = vector.load %arg2[%c0_1, %c0_2] : memref<1024x128xf32, #tpu.memory_space<vmem>>, vector<1024x128xf32>
    %3 = arith.truncf %2 : vector<1024x128xf32> to vector<1024x128xbf16>
    %cst = arith.constant dense<0.000000e+00> : vector<16x128xf32>
    %4 = tpu.matmul %1, %3, %cst {dimension_numbers = #tpu.dot_dimension_numbers<[1], [0], [0], [1], [0, 0, 1, 1], [], []>} : vector<16x1024xbf16>, vector<1024x128xbf16>, vector<16x128xf32> -> vector<16x128xf32>
    %c0_3 = arith.constant 0 : index
    %c0_4 = arith.constant 0 : index
    %5 = vector.load %arg3[%c0_3, %c0_4] : memref<1x128xf32, #tpu.memory_space<vmem>>, vector<1x128xf32>
    %6 = vector.broadcast %5 : vector<1x128xf32> to vector<16x128xf32>
    %7 = arith.addf %4, %6 : vector<16x128xf32>
    %cst_5 = arith.constant 0.000000e+00 : f32
    %8 = vector.broadcast %cst_5 : f32 to vector<16x128xf32>
    %9 = arith.maximumf %7, %8 : vector<16x128xf32>
    %c0_6 = arith.constant 0 : index
    %c0_7 = arith.constant 0 : index
    %10 = vector.load %arg6[%c0_6, %c0_7] : memref<16x128xf32, #tpu.memory_space<vmem>>, vector<16x128xf32>
    tpu.vector_store %arg6[%c0_6, %c0_7], %9 {strides = array<i32>} : memref<16x128xf32, #tpu.memory_space<vmem>>, vector<16x128xf32>,
    %11 = arith.truncf %9 : vector<16x128xf32> to vector<16x128xbf16>
    %c0_8 = arith.constant 0 : index
    %c0_9 = arith.constant 0 : index
    %12 = vector.load %arg4[%c0_8, %c0_9] : memref<128x128xf32, #tpu.memory_space<vmem>>, vector<128x128xf32>
    %13 = arith.truncf %12 : vector<128x128xf32> to vector<128x128xbf16>
    %cst_10 = arith.constant dense<0.000000e+00> : vector<16x128xf32>
    %14 = tpu.matmul %11, %13, %cst_10 {dimension_numbers = #tpu.dot_dimension_numbers<[1], [0], [0], [1], [0, 0, 1, 1], [], []>} : vector<16x128xbf16>, vector<128x128xbf16>, vector<16x128xf32> -> vector<16x128xf32>
    %c0_11 = arith.constant 0 : index
    %c0_12 = arith.constant 0 : index
    %15 = vector.load %arg5[%c0_11, %c0_12] : memref<1x128xf32, #tpu.memory_space<vmem>>, vector<1x128xf32>
    %16 = vector.broadcast %15 : vector<1x128xf32> to vector<16x128xf32>
    %17 = arith.addf %14, %16 : vector<16x128xf32>
    %c0_13 = arith.constant 0 : index
    %c0_14 = arith.constant 0 : index
    %18 = vector.load %arg7[%c0_13, %c0_14] : memref<16x128xf32, #tpu.memory_space<vmem>>, vector<16x128xf32>
    tpu.vector_store %arg7[%c0_13, %c0_14], %17 {strides = array<i32>} : memref<16x128xf32, #tpu.memory_space<vmem>>, vector<16x128xf32>,
    return
  }
  func.func @transform_0(%arg0: i32) -> (i32, i32) {
    %c0_i32 = arith.constant 0 : i32
    %c0_i32_0 = arith.constant 0 : i32
    return %arg0, %c0_i32 : i32, i32
  }
  func.func @transform_1(%arg0: i32) -> (i32, i32) {
    %c0_i32 = arith.constant 0 : i32
    %c0_i32_0 = arith.constant 0 : i32
    %c0_i32_1 = arith.constant 0 : i32
    return %c0_i32, %c0_i32_0 : i32, i32
  }
  func.func @transform_2(%arg0: i32) -> (i32, i32) {
    %c0_i32 = arith.constant 0 : i32
    %c0_i32_0 = arith.constant 0 : i32
    %c0_i32_1 = arith.constant 0 : i32
    return %c0_i32, %c0_i32_0 : i32, i32
  }
  func.func @transform_3(%arg0: i32) -> (i32, i32) {
    %c0_i32 = arith.constant 0 : i32
    %c0_i32_0 = arith.constant 0 : i32
    %c0_i32_1 = arith.constant 0 : i32
    return %c0_i32, %c0_i32_0 : i32, i32
  }
  func.func @transform_4(%arg0: i32) -> (i32, i32) {
    %c0_i32 = arith.constant 0 : i32
    %c0_i32_0 = arith.constant 0 : i32
    %c0_i32_1 = arith.constant 0 : i32
    return %c0_i32, %c0_i32_0 : i32, i32
  }
  func.func @transform_5(%arg0: i32) -> (i32, i32) {
    %c0_i32 = arith.constant 0 : i32
    %c0_i32_0 = arith.constant 0 : i32
    return %arg0, %c0_i32 : i32, i32
  }
  func.func @transform_6(%arg0: i32) -> (i32, i32) {
    %c0_i32 = arith.constant 0 : i32
    %c0_i32_0 = arith.constant 0 : i32
    return %arg0, %c0_i32 : i32, i32
  }
}

</mosaic_0001>

<bundles_post_ra>
// kernel: tpu_custom_call.1
= control target key start
LH: loop header
LB: loop body
LE: loop exit
PB: predicated region body
PF: predicated region fallthrough
CT: control target
= control target key end

     0   :  { %12 = vsyncpa [#allocation3], 0  ;;  %s938_s0 = inlined_call_operand.hbm [shape: f32[16,1024], index: 0, kind: input, shape index: {}]   ;;  %s939_s1 = inlined_call_operand.hbm [shape: f32[1024,128], index: 1, kind: input, shape index: {}]   ;;  %s940_s2 = inlined_call_operand.vmem [shape: f32[1,128], index: 2, kind: input, shape index: {}]   ;;  %s941_s3 = inlined_call_operand.hbm [shape: f32[128,128], index: 3, kind: input, shape index: {}]   ;;  %s942_s4 = inlined_call_operand.vmem [shape: f32[1,128], index: 4, kind: input, shape index: {}]   ;;  %s943_s5 = inlined_call_operand.hbm [shape: f32[16,128], index: 5, kind: output, shape index: {0}]   ;;  %s944_s6 = inlined_call_operand.hbm [shape: f32[16,128], index: 6, kind: output, shape index: {1}]  }
   0x1   :  { %13 = vsyncpa [#allocation6], 0 }
   0x2   :  { %14 = vsyncpa [#allocation4], 0 }
   0x3   :  { %15 = vsyncpa [#allocation10], 0  ;;  %s814_s21 = smov [#allocation5]   ;;  %s696_s25 = scalar_lea.hbm %s939_s1, 16384 }
   0x4   :  { %s33_s22 = sshll.u32 %s814_s21, 4  ;;  %p697_p0 = scmp.ne.s32.totalorder %s939_s1, %s696_s25  ;;  %s34_s22 = int_to_ptr.vmem [resolvable:$true] %s33_s22 }
   0x5   :  { %p700_p1 = scmp.lt.u32.totalorder %s696_s25, %s939_s1 }
   0x7   :  { %p702_p2 = pnand %p700_p1, %p697_p0 }
   0x9   :  { %705 = shalt.err (!%p702_p2)
}
   0xa   :  { %s706_s30 = scalar_lea.vmem %s34_s22, 16384  ;;  %p711_p4 = scmp.lt.s32.totalorder %s34_s22, %s34_s22 }
   0xb   :  { %p707_p3 = scmp.ne.s32.totalorder %s34_s22, %s706_s30  ;;  %p712_p5 = scmp.lt.s32.totalorder %s706_s30, %s706_s30 }
   0xd   :  { %p713_p6 = por %p712_p5, %p711_p4 }
   0xf   :  { %p714_p7 = pnand %p713_p6, %p707_p3 }
  0x11   :  { %717 = shalt.err (!%p714_p7)
}
  0x12   :  { %s815_s7 = smov 128   ;;  %s816_s8 = smov 8  }
  0x13   :  { %39 = dma.hbm_to_vmem [thread:$0]  %s939_s1, 16384, %s34_s22, [#allocation6], %s815_s7, %s815_s7, %s816_s8  }
  0x14   :  { %s817_s11 = smov [#allocation2]   ;;  %s718_s15 = scalar_lea.hbm %s938_s0, 2048 }
  0x15   :  { %s21_s12 = sshll.u32 %s817_s11, 4  ;;  %p719_p8 = scmp.ne.s32.totalorder %s938_s0, %s718_s15  ;;  %s22_s12 = int_to_ptr.vmem [resolvable:$true] %s21_s12 }
  0x16   :  { %p722_p9 = scmp.lt.u32.totalorder %s718_s15, %s938_s0 }
  0x18   :  { %p724_p10 = pnand %p722_p9, %p719_p8 }
  0x1a   :  { %727 = shalt.err (!%p724_p10)
}
  0x1b   :  { %s728_s20 = scalar_lea.vmem %s22_s12, 2048  ;;  %p733_p12 = scmp.lt.s32.totalorder %s22_s12, %s22_s12 }
  0x1c   :  { %p729_p11 = scmp.ne.s32.totalorder %s22_s12, %s728_s20  ;;  %p734_p13 = scmp.lt.s32.totalorder %s728_s20, %s728_s20 }
  0x1e   :  { %p735_p0 = por %p734_p13, %p733_p12 }
  0x20   :  { %p736_p1 = pnand %p735_p0, %p729_p11 }
  0x22   :  { %739 = shalt.err (!%p736_p1)
}
  0x23   :  { %s818_s1 = smov 1024   ;;  %s819_s21 = smov 64  }
  0x24   :  { %27 = dma.hbm_to_vmem [thread:$0]  %s938_s0, 2048, %s22_s12, [#allocation3], %s818_s1, %s818_s1, %s819_s21  }
  0x25   :  { %s820_s24 = smov [#allocation7]   ;;  %s740_s28 = scalar_lea.hbm %s941_s3, 2048 }
  0x26   :  { %s47_s25 = sshll.u32 %s820_s24, 4  ;;  %p741_p2 = scmp.ne.s32.totalorder %s941_s3, %s740_s28  ;;  %s48_s25 = int_to_ptr.vmem [resolvable:$true] %s47_s25 }
  0x27   :  { %p744_p3 = scmp.lt.u32.totalorder %s740_s28, %s941_s3 }
  0x29   :  { %p746_p4 = pnand %p744_p3, %p741_p2 }
  0x2b   :  { %749 = shalt.err (!%p746_p4)
}
  0x2c   :  { %s750_s11 = scalar_lea.vmem %s48_s25, 2048  ;;  %p755_p6 = scmp.lt.s32.totalorder %s48_s25, %s48_s25 }
  0x2d   :  { %p751_p5 = scmp.ne.s32.totalorder %s48_s25, %s750_s11  ;;  %p756_p7 = scmp.lt.s32.totalorder %s750_s11, %s750_s11 }
  0x2f   :  { %p757_p8 = por %p756_p7, %p755_p6 }
  0x31   :  { %p758_p9 = pnand %p757_p8, %p751_p5 }
  0x33   :  { %761 = shalt.err (!%p758_p9)
}
  0x34   :  { %53 = dma.hbm_to_vmem [thread:$0]  %s941_s3, 2048, %s48_s25, [#allocation6], %s815_s7, %s815_s7, %s816_s8  }
  0x35   :  { %806 = dma.done.wait [#allocation3], 2048  }
  0x36   :  { %807 = vsyncadd [#allocation3], 4294965248 }
  0x37   :  { %808 = dma.done.wait [#allocation6], 18432  }
  0x38   :  { %809 = vsyncadd [#allocation6], 4294948864  ;;  %v106_v0 = vld [vmem:[#allocation5 + $0x80] sm:$0xff]  ;;  %v107_v1 = vld [vmem:[#allocation5 + $0x88] sm:$0xff]  ;;  %vm822_vm0 = vmmov 0  }
  0x39   :  { %v138_v2 = vld [vmem:[#allocation5 + $0x180] sm:$0xff]  ;;  %v226_v3 = vpack.c.bf16 %v107_v1, %v106_v0  ;;  %v139_v4 = vld [vmem:[#allocation5 + $0x188] sm:$0xff]  ;;  %v108_v11 = vld [vmem:[#allocation5 + $0x90] sm:$0xff] }
  0x3a   :  { %v90_v5 = vld [vmem:[#allocation5] sm:$0xff]  ;;  %v91_v6 = vld [vmem:[#allocation5 + $0x8] sm:$0xff]  ;;  %v242_v7 = vpack.c.bf16 %v139_v4, %v138_v2  ;;  %v109_v13 = vld [vmem:[#allocation5 + $0x98] sm:$0xff] }
  0x3b   :  { %v218_v8 = vpack.c.bf16 %v91_v6, %v90_v5  ;;  %v122_v9 = vld [vmem:[#allocation5 + $0x100] sm:$0xff]  ;;  %v123_v10 = vld [vmem:[#allocation5 + $0x108] sm:$0xff]  ;;  %568 = vmatprep.subr.bf16.mxu0 %v226_v3  ;;  %v140_v14 = vld [vmem:[#allocation5 + $0x190] sm:$0xff]  ;;  %v227_v16 = vpack.c.bf16 %v109_v13, %v108_v11 }
  0x3c   :  { %v234_v12 = vpack.c.bf16 %v123_v10, %v122_v9  ;;  %v141_v15 = vld [vmem:[#allocation5 + $0x198] sm:$0xff]  ;;  %590 = vmatprep.subr.bf16.mxu1 %v242_v7  ;;  %v92_v18 = vld [vmem:[#allocation5 + $0x10] sm:$0xff]  ;;  %v110_v23 = vld [vmem:[#allocation5 + $0xa0] sm:$0xff] }
  0x3d   :  { %569 = vmatpush3.bf16.msra.mxu0 %v218_v8  ;;  %v243_v17 = vpack.c.bf16 %v141_v15, %v140_v14  ;;  %v93_v19 = vld [vmem:[#allocation5 + $0x18] sm:$0xff]  ;;  %v124_v20 = vld [vmem:[#allocation5 + $0x110] sm:$0xff]  ;;  %v111_v24 = vld [vmem:[#allocation5 + $0xa8] sm:$0xff] }
  0x3e   :  { %591 = vmatpush3.bf16.msra.mxu1 %v234_v12  ;;  %v219_v21 = vpack.c.bf16 %v93_v19, %v92_v18  ;;  %v125_v22 = vld [vmem:[#allocation5 + $0x118] sm:$0xff]  ;;  %570 = vmatprep.subr.bf16.mxu0 %v227_v16  ;;  %v228_v26 = vpack.c.bf16 %v111_v24, %v110_v23  ;;  %v142_v27 = vld [vmem:[#allocation5 + $0x1a0] sm:$0xff]  ;;  %v143_v28 = vld [vmem:[#allocation5 + $0x1a8] sm:$0xff] }
  0x3f   :  { %592 = vmatprep.subr.bf16.mxu1 %v243_v17  ;;  %v235_v25 = vpack.c.bf16 %v125_v22, %v124_v20  ;;  %v94_v29 = vld [vmem:[#allocation5 + $0x20] sm:$0xff]  ;;  %v244_v30 = vpack.c.bf16 %v143_v28, %v142_v27  ;;  %v95_v31 = vld [vmem:[#allocation5 + $0x28] sm:$0xff]  ;;  %v112_v35 = vld [vmem:[#allocation5 + $0xb0] sm:$0xff] }
  0x40   :  { %v126_v32 = vld [vmem:[#allocation5 + $0x120] sm:$0xff]  ;;  %v127_v33 = vld [vmem:[#allocation5 + $0x128] sm:$0xff]  ;;  %v220_v34 = vpack.c.bf16 %v95_v31, %v94_v29  ;;  %v113_v36 = vld [vmem:[#allocation5 + $0xb8] sm:$0xff] }
  0x41   :  { %571 = vmatpush3.bf16.msra.mxu0 %v219_v21  ;;  %v144_v37 = vld [vmem:[#allocation5 + $0x1b0] sm:$0xff]  ;;  %v236_v38 = vpack.c.bf16 %v127_v33, %v126_v32  ;;  %v229_v39 = vpack.c.bf16 %v113_v36, %v112_v35  ;;  %v145_v40 = vld [vmem:[#allocation5 + $0x1b8] sm:$0xff]  ;;  %v114_v46 = vld [vmem:[#allocation5 + $0xc0] sm:$0xff] }
  0x42   :  { %593 = vmatpush3.bf16.msra.mxu1 %v235_v25  ;;  %572 = vmatprep.subr.bf16.mxu0 %v228_v26  ;;  %v96_v41 = vld [vmem:[#allocation5 + $0x30] sm:$0xff]  ;;  %v97_v42 = vld [vmem:[#allocation5 + $0x38] sm:$0xff]  ;;  %v245_v43 = vpack.c.bf16 %v145_v40, %v144_v37  ;;  %v115_v47 = vld [vmem:[#allocation5 + $0xc8] sm:$0xff] }
  0x43   :  { %594 = vmatprep.subr.bf16.mxu1 %v244_v30  ;;  %v128_v44 = vld [vmem:[#allocation5 + $0x130] sm:$0xff]  ;;  %v129_v45 = vld [vmem:[#allocation5 + $0x138] sm:$0xff]  ;;  %v146_v48 = vld [vmem:[#allocation5 + $0x1c0] sm:$0xff]  ;;  %v221_v50 = vpack.c.bf16 %v97_v42, %v96_v41  ;;  %v230_v52 = vpack.c.bf16 %v115_v47, %v114_v46 }
  0x44   :  { %v147_v49 = vld [vmem:[#allocation5 + $0x1c8] sm:$0xff]  ;;  %v237_v51 = vpack.c.bf16 %v129_v45, %v128_v44  ;;  %v98_v53 = vld [vmem:[#allocation5 + $0x40] sm:$0xff]  ;;  %v116_v58 = vld [vmem:[#allocation5 + $0xd0] sm:$0xff] }
  0x45   :  { %573 = vmatpush3.bf16.msra.mxu0 %v220_v34  ;;  %v99_v54 = vld [vmem:[#allocation5 + $0x48] sm:$0xff]  ;;  %v130_v55 = vld [vmem:[#allocation5 + $0x140] sm:$0xff]  ;;  %v246_v56 = vpack.c.bf16 %v147_v49, %v146_v48  ;;  %v117_v59 = vld [vmem:[#allocation5 + $0xd8] sm:$0xff] }
  0x46   :  { %595 = vmatpush3.bf16.msra.mxu1 %v236_v38  ;;  %574 = vmatprep.subr.bf16.mxu0 %v229_v39  ;;  %v131_v57 = vld [vmem:[#allocation5 + $0x148] sm:$0xff]  ;;  %v148_v60 = vld [vmem:[#allocation5 + $0x1d0] sm:$0xff]  ;;  %v149_v61 = vld [vmem:[#allocation5 + $0x1d8] sm:$0xff]  ;;  %v222_v62 = vpack.c.bf16 %v99_v54, %v98_v53  ;;  %v231_v0 = vpack.c.bf16 %v117_v59, %v116_v58 }
  0x47   :  { %596 = vmatprep.subr.bf16.mxu1 %v245_v43  ;;  %v238_v63 = vpack.c.bf16 %v131_v57, %v130_v55  ;;  %v100_v1 = vld [vmem:[#allocation5 + $0x50] sm:$0xff]  ;;  %v101_v2 = vld [vmem:[#allocation5 + $0x58] sm:$0xff]  ;;  %v247_v4 = vpack.c.bf16 %v149_v61, %v148_v60  ;;  %v118_v6 = vld [vmem:[#allocation5 + $0xe0] sm:$0xff] }
  0x48   :  { %v132_v3 = vld [vmem:[#allocation5 + $0x150] sm:$0xff]  ;;  %v133_v5 = vld [vmem:[#allocation5 + $0x158] sm:$0xff]  ;;  %v119_v7 = vld [vmem:[#allocation5 + $0xe8] sm:$0xff]  ;;  %v223_v11 = vpack.c.bf16 %v101_v2, %v100_v1 }
  0x49   :  { %575 = vmatpush3.bf16.msra.mxu0 %v221_v50  ;;  %v150_v8 = vld [vmem:[#allocation5 + $0x1e0] sm:$0xff]  ;;  %v151_v9 = vld [vmem:[#allocation5 + $0x1e8] sm:$0xff]  ;;  %v239_v15 = vpack.c.bf16 %v133_v5, %v132_v3  ;;  %v232_v16 = vpack.c.bf16 %v119_v7, %v118_v6  ;;  %v120_v17 = vld [vmem:[#allocation5 + $0xf0] sm:$0xff] }
  0x4a   :  { %597 = vmatpush3.bf16.msra.mxu1 %v237_v51  ;;  %576 = vmatprep.subr.bf16.mxu0 %v230_v52  ;;  %v102_v10 = vld [vmem:[#allocation5 + $0x60] sm:$0xff]  ;;  %v103_v12 = vld [vmem:[#allocation5 + $0x68] sm:$0xff]  ;;  %v248_v20 = vpack.c.bf16 %v151_v9, %v150_v8  ;;  %v121_v21 = vld [vmem:[#allocation5 + $0xf8] sm:$0xff] }
  0x4b   :  { %598 = vmatprep.subr.bf16.mxu1 %v246_v56  ;;  %v134_v13 = vld [vmem:[#allocation5 + $0x160] sm:$0xff]  ;;  %v135_v14 = vld [vmem:[#allocation5 + $0x168] sm:$0xff]  ;;  %v69_v23 = vld [vmem:[#allocation2 + $0x18] sm:$0xff]  ;;  %v224_v28 = vpack.c.bf16 %v103_v12, %v102_v10  ;;  %v233_v30 = vpack.c.bf16 %v121_v21, %v120_v17 }
  0x4c   :  { %v67_v18 = vld [vmem:[#allocation2 + $0x8] sm:$0xff]  ;;  %v77_v24 = vld [vmem:[#allocation2 + $0x58] sm:$0xff]  ;;  %v152_v25 = vld [vmem:[#allocation5 + $0x1f0] sm:$0xff]  ;;  %v240_v29 = vpack.c.bf16 %v135_v14, %v134_v13 }
  0x4d   :  { %577 = vmatpush3.bf16.msra.mxu0 %v222_v62  ;;  %v75_v19 = vld [vmem:[#allocation2 + $0x48] sm:$0xff]  ;;  %v153_v26 = vld [vmem:[#allocation5 + $0x1f8] sm:$0xff]  ;;  %v85_v27 = vpack.c.bf16 %v77_v24, %v69_v23  ;;  %v104_v31 = vld [vmem:[#allocation5 + $0x70] sm:$0xff] }
  0x4e   :  { %599 = vmatpush3.bf16.msra.mxu1 %v238_v63  ;;  %578 = vmatprep.subr.bf16.mxu0 %v231_v0  ;;  %v83_v22 = vpack.c.bf16 %v75_v19, %v67_v18  ;;  %v105_v32 = vld [vmem:[#allocation5 + $0x78] sm:$0xff]  ;;  %v136_v33 = vld [vmem:[#allocation5 + $0x170] sm:$0xff]  ;;  %v249_v34 = vpack.c.bf16 %v153_v26, %v152_v25  ;;  %v170_v36 = vld [vmem:[#allocation5 + $0x280] sm:$0xff] }
  0x4f   :  { %600 = vmatprep.subr.bf16.mxu1 %v247_v4  ;;  %v137_v35 = vld [vmem:[#allocation5 + $0x178] sm:$0xff]  ;;  %362 = vmatprep.mubr.bf16.mxu1 %v85_v27  ;;  %v171_v37 = vld [vmem:[#allocation5 + $0x288] sm:$0xff]  ;;  %v66_v38 = vld [vmem:[#allocation2] sm:$0xff]  ;;  %v225_v41 = vpack.c.bf16 %v105_v32, %v104_v31 }
  0x50   :  { %321 = vmatprep.mubr.bf16.mxu0 %v83_v22  ;;  %v202_v39 = vld [vmem:[#allocation5 + $0x380] sm:$0xff]  ;;  %v203_v40 = vld [vmem:[#allocation5 + $0x388] sm:$0xff]  ;;  %v68_v43 = vld [vmem:[#allocation2 + $0x10] sm:$0xff]  ;;  %v241_v45 = vpack.c.bf16 %v137_v35, %v136_v33  ;;  %v258_v46 = vpack.c.bf16 %v171_v37, %v170_v36 }
  0x51   :  { %579 = vmatpush3.bf16.msra.mxu0 %v223_v11  ;;  %v74_v42 = vld [vmem:[#allocation2 + $0x40] sm:$0xff]  ;;  %v76_v44 = vld [vmem:[#allocation2 + $0x50] sm:$0xff]  ;;  %v155_v48 = vld [vmem:[#allocation5 + $0x208] sm:$0xff]  ;;  %v274_v50 = vpack.c.bf16 %v203_v40, %v202_v39 }
  0x52   :  { %601 = vmatpush3.bf16.msra.mxu1 %v239_v15  ;;  %580 = vmatprep.subr.bf16.mxu0 %v232_v16  ;;  %v154_v47 = vld [vmem:[#allocation5 + $0x200] sm:$0xff]  ;;  %v187_v51 = vld [vmem:[#allocation5 + $0x308] sm:$0xff]  ;;  %v172_v52 = vld [vmem:[#allocation5 + $0x290] sm:$0xff]  ;;  %v82_v54 = vpack.c.bf16 %v74_v42, %v66_v38  ;;  %v84_v57 = vpack.c.bf16 %v76_v44, %v68_v43 }
  0x53   :  { %602 = vmatprep.subr.bf16.mxu1 %v248_v20  ;;  %v186_v49 = vld [vmem:[#allocation5 + $0x300] sm:$0xff]  ;;  %v173_v53 = vld [vmem:[#allocation5 + $0x298] sm:$0xff]  ;;  %v204_v55 = vld [vmem:[#allocation5 + $0x390] sm:$0xff]  ;;  %v250_v58 = vpack.c.bf16 %v155_v48, %v154_v47 }
  0x54   :  { %v205_v56 = vld [vmem:[#allocation5 + $0x398] sm:$0xff]  ;;  %v266_v59 = vpack.c.bf16 %v187_v51, %v186_v49  ;;  %v259_v60 = vpack.c.bf16 %v173_v53, %v172_v52  ;;  %v156_v61 = vld [vmem:[#allocation5 + $0x210] sm:$0xff]  ;;  %v174_v2 = vld [vmem:[#allocation5 + $0x2a0] sm:$0xff] }
  0x55   :  { %581 = vmatpush3.bf16.msra.mxu0 %v224_v28  ;;  %v157_v62 = vld [vmem:[#allocation5 + $0x218] sm:$0xff]  ;;  %v188_v63 = vld [vmem:[#allocation5 + $0x310] sm:$0xff]  ;;  %v275_v0 = vpack.c.bf16 %v205_v56, %v204_v55  ;;  %v175_v3 = vld [vmem:[#allocation5 + $0x2a8] sm:$0xff] }
  0x56   :  { %603 = vmatpush3.bf16.msra.mxu1 %v240_v29  ;;  %582 = vmatprep.subr.bf16.mxu0 %v233_v30  ;;  %v189_v1 = vld [vmem:[#allocation5 + $0x318] sm:$0xff]  ;;  %v206_v4 = vld [vmem:[#allocation5 + $0x3a0] sm:$0xff]  ;;  %v207_v5 = vld [vmem:[#allocation5 + $0x3a8] sm:$0xff]  ;;  %v251_v6 = vpack.c.bf16 %v157_v62, %v156_v61  ;;  %v260_v8 = vpack.c.bf16 %v175_v3, %v174_v2 }
  0x57   :  { %604 = vmatprep.subr.bf16.mxu1 %v249_v34  ;;  %v267_v7 = vpack.c.bf16 %v189_v1, %v188_v63  ;;  %v158_v9 = vld [vmem:[#allocation5 + $0x220] sm:$0xff]  ;;  %v159_v10 = vld [vmem:[#allocation5 + $0x228] sm:$0xff]  ;;  %v276_v12 = vpack.c.bf16 %v207_v5, %v206_v4  ;;  %v176_v14 = vld [vmem:[#allocation5 + $0x2b0] sm:$0xff] }
  0x58   :  { %v190_v11 = vld [vmem:[#allocation5 + $0x320] sm:$0xff]  ;;  %v191_v13 = vld [vmem:[#allocation5 + $0x328] sm:$0xff]  ;;  %v177_v15 = vld [vmem:[#allocation5 + $0x2b8] sm:$0xff]  ;;  %v252_v18 = vpack.c.bf16 %v159_v10, %v158_v9 }
  0x59   :  { %583 = vmatpush3.bf16.msra.mxu0 %v225_v41  ;;  %v208_v16 = vld [vmem:[#allocation5 + $0x3b0] sm:$0xff]  ;;  %v209_v17 = vld [vmem:[#allocation5 + $0x3b8] sm:$0xff]  ;;  %v268_v19 = vpack.c.bf16 %v191_v13, %v190_v11  ;;  %v261_v20 = vpack.c.bf16 %v177_v15, %v176_v14  ;;  %v178_v26 = vld [vmem:[#allocation5 + $0x2c0] sm:$0xff] }
  0x5a   :  { %605 = vmatpush3.bf16.msra.mxu1 %v241_v45  ;;  %612 = vmatprep.subr.bf16.mxu0 %v258_v46  ;;  %v160_v21 = vld [vmem:[#allocation5 + $0x230] sm:$0xff]  ;;  %v161_v22 = vld [vmem:[#allocation5 + $0x238] sm:$0xff]  ;;  %v277_v24 = vpack.c.bf16 %v209_v17, %v208_v16  ;;  %v179_v27 = vld [vmem:[#allocation5 + $0x2c8] sm:$0xff] }
  0x5b   :  { %634 = vmatprep.subr.bf16.mxu1 %v274_v50  ;;  %v192_v23 = vld [vmem:[#allocation5 + $0x330] sm:$0xff]  ;;  %v193_v25 = vld [vmem:[#allocation5 + $0x338] sm:$0xff]  ;;  %v210_v28 = vld [vmem:[#allocation5 + $0x3c0] sm:$0xff]  ;;  %v253_v31 = vpack.c.bf16 %v161_v22, %v160_v21  ;;  %v262_v36 = vpack.c.bf16 %v179_v27, %v178_v26  ;;  %v821_v27 = vmov 0.0  }
  0x5c   :  { %322 = vmatmul.mubr.bf16.vlgmr.msra.gmra.mrb[0].mxu0 %v82_v54  ;;  %v211_v29 = vld [vmem:[#allocation5 + $0x3c8] sm:$0xff]  ;;  %v162_v30 = vld [vmem:[#allocation5 + $0x240] sm:$0xff]  ;;  %v269_v35 = vpack.c.bf16 %v193_v25, %v192_v23  ;;  %v180_v37 = vld [vmem:[#allocation5 + $0x2d0] sm:$0xff] }
  0x5d   :  { %363 = vmatmul.mubr.bf16.vlgmr.msra.gmra.mrb[0].mxu1 %v84_v57  ;;  %613 = vmatpush3.bf16.msra.mxu0 %v250_v58  ;;  %v163_v32 = vld [vmem:[#allocation5 + $0x248] sm:$0xff]  ;;  %v194_v33 = vld [vmem:[#allocation5 + $0x340] sm:$0xff]  ;;  %v278_v40 = vpack.c.bf16 %v211_v29, %v210_v28  ;;  %v181_v41 = vld [vmem:[#allocation5 + $0x2d8] sm:$0xff] }
  0x5e   :  { %635 = vmatpush3.bf16.msra.mxu1 %v266_v59  ;;  %614 = vmatprep.subr.bf16.mxu0 %v259_v60  ;;  %v195_v34 = vld [vmem:[#allocation5 + $0x348] sm:$0xff]  ;;  %v73_v43 = vld [vmem:[#allocation2 + $0x38] sm:$0xff]  ;;  %v212_v45 = vld [vmem:[#allocation5 + $0x3d0] sm:$0xff]  ;;  %v254_v48 = vpack.c.bf16 %v163_v32, %v162_v30  ;;  %v263_v50 = vpack.c.bf16 %v181_v41, %v180_v37 }
  0x5f   :  { %636 = vmatprep.subr.bf16.mxu1 %v275_v0  ;;  %v71_v38 = vld [vmem:[#allocation2 + $0x28] sm:$0xff]  ;;  %v81_v44 = vld [vmem:[#allocation2 + $0x78] sm:$0xff]  ;;  %v270_v49 = vpack.c.bf16 %v195_v34, %v194_v33  ;;  %v164_v51 = vld [vmem:[#allocation5 + $0x250] sm:$0xff] }
  0x60   :  { %v79_v39 = vld [vmem:[#allocation2 + $0x68] sm:$0xff]  ;;  %v213_v46 = vld [vmem:[#allocation5 + $0x3d8] sm:$0xff]  ;;  %v89_v47 = vpack.c.bf16 %v81_v44, %v73_v43  ;;  %v196_v53 = vld [vmem:[#allocation5 + $0x350] sm:$0xff] }
  0x61   :  { %615 = vmatpush3.bf16.msra.mxu0 %v251_v6  ;;  %v87_v42 = vpack.c.bf16 %v79_v39, %v71_v38  ;;  %v165_v52 = vld [vmem:[#allocation5 + $0x258] sm:$0xff]  ;;  %v279_v54 = vpack.c.bf16 %v213_v46, %v212_v45  ;;  %v182_v56 = vld [vmem:[#allocation5 + $0x2e0] sm:$0xff]  ;;  %v183_v57 = vld [vmem:[#allocation5 + $0x2e8] sm:$0xff] }
  0x62   :  { %637 = vmatpush3.bf16.msra.mxu1 %v267_v7  ;;  %616 = vmatprep.subr.bf16.mxu0 %v260_v8  ;;  %v197_v55 = vld [vmem:[#allocation5 + $0x358] sm:$0xff]  ;;  %v214_v58 = vld [vmem:[#allocation5 + $0x3e0] sm:$0xff]  ;;  %v215_v59 = vld [vmem:[#allocation5 + $0x3e8] sm:$0xff]  ;;  %v255_v60 = vpack.c.bf16 %v165_v52, %v164_v51  ;;  %v264_v62 = vpack.c.bf16 %v183_v57, %v182_v56 }
  0x63   :  { %638 = vmatprep.subr.bf16.mxu1 %v276_v12  ;;  %403 = vmatprep.mubr.bf16.mxu0 %v87_v42  ;;  %v271_v61 = vpack.c.bf16 %v197_v55, %v196_v53  ;;  %v166_v63 = vld [vmem:[#allocation5 + $0x260] sm:$0xff]  ;;  %v167_v0 = vld [vmem:[#allocation5 + $0x268] sm:$0xff]  ;;  %v280_v2 = vpack.c.bf16 %v215_v59, %v214_v58  ;;  %v184_v4 = vld [vmem:[#allocation5 + $0x2f0] sm:$0xff] }
  0x64   :  { %444 = vmatprep.mubr.bf16.mxu1 %v89_v47  ;;  %v198_v1 = vld [vmem:[#allocation5 + $0x360] sm:$0xff]  ;;  %v199_v3 = vld [vmem:[#allocation5 + $0x368] sm:$0xff]  ;;  %v185_v5 = vld [vmem:[#allocation5 + $0x2f8] sm:$0xff]  ;;  %v256_v8 = vpack.c.bf16 %v167_v0, %v166_v63 }
  0x65   :  { %617 = vmatpush3.bf16.msra.mxu0 %v252_v18  ;;  %v216_v6 = vld [vmem:[#allocation5 + $0x3f0] sm:$0xff]  ;;  %v217_v7 = vld [vmem:[#allocation5 + $0x3f8] sm:$0xff]  ;;  %v272_v9 = vpack.c.bf16 %v199_v3, %v198_v1  ;;  %v265_v10 = vpack.c.bf16 %v185_v5, %v184_v4  ;;  %v70_v17 = vld [vmem:[#allocation2 + $0x20] sm:$0xff] }
  0x66   :  { %639 = vmatpush3.bf16.msra.mxu1 %v268_v19  ;;  %618 = vmatprep.subr.bf16.mxu0 %v261_v20  ;;  %v168_v11 = vld [vmem:[#allocation5 + $0x270] sm:$0xff]  ;;  %v169_v12 = vld [vmem:[#allocation5 + $0x278] sm:$0xff]  ;;  %v281_v13 = vpack.c.bf16 %v217_v7, %v216_v6  ;;  %v78_v18 = vld [vmem:[#allocation2 + $0x60] sm:$0xff] }
  0x67   :  { %640 = vmatprep.subr.bf16.mxu1 %v277_v24  ;;  %v200_v14 = vld [vmem:[#allocation5 + $0x370] sm:$0xff]  ;;  %v201_v15 = vld [vmem:[#allocation5 + $0x378] sm:$0xff]  ;;  %v257_v16 = vpack.c.bf16 %v169_v12, %v168_v11  ;;  %v86_v22 = vpack.c.bf16 %v78_v18, %v70_v17  ;;  %v458_v24 = vld [vmem:[#allocation7] sm:$0xff] }
  0x68   :  { %v273_v19 = vpack.c.bf16 %v201_v15, %v200_v14  ;;  %v72_v20 = vld [vmem:[#allocation2 + $0x30] sm:$0xff]  ;;  %v459_v25 = vld [vmem:[#allocation7 + $0x8] sm:$0xff]  ;;  %v461_v29 = vld [vmem:[#allocation7 + $0x18] sm:$0xff] }
  0x69   :  { %619 = vmatpush3.bf16.msra.mxu0 %v253_v31  ;;  %v80_v21 = vld [vmem:[#allocation2 + $0x70] sm:$0xff]  ;;  %v474_v28 = vpack.c.bf16 %v459_v25, %v458_v24  ;;  %v462_v31 = vld [vmem:[#allocation7 + $0x20] sm:$0xff]  ;;  %v463_v32 = vld [vmem:[#allocation7 + $0x28] sm:$0xff] }
  0x6a   :  { %641 = vmatpush3.bf16.msra.mxu1 %v269_v35  ;;  %620 = vmatprep.subr.bf16.mxu0 %v262_v36  ;;  %v88_v23 = vpack.c.bf16 %v80_v21, %v72_v20  ;;  %v460_v26 = vld [vmem:[#allocation7 + $0x10] sm:$0xff]  ;;  %v476_v33 = vpack.c.bf16 %v463_v32, %v462_v31  ;;  %v465_v35 = vld [vmem:[#allocation7 + $0x38] sm:$0xff]  ;;  %v466_v37 = vld [vmem:[#allocation7 + $0x40] sm:$0xff] }
  0x6b   :  { %642 = vmatprep.subr.bf16.mxu1 %v278_v40  ;;  %v475_v30 = vpack.c.bf16 %v461_v29, %v460_v26  ;;  %v464_v34 = vld [vmem:[#allocation7 + $0x30] sm:$0xff]  ;;  %v467_v38 = vld [vmem:[#allocation7 + $0x48] sm:$0xff]  ;;  %v469_v41 = vld [vmem:[#allocation7 + $0x58] sm:$0xff] }
  0x6c   :  { %v477_v36 = vpack.c.bf16 %v465_v35, %v464_v34  ;;  %v478_v39 = vpack.c.bf16 %v467_v38, %v466_v37  ;;  %v468_v40 = vld [vmem:[#allocation7 + $0x50] sm:$0xff]  ;;  %v470_v43 = vld [vmem:[#allocation7 + $0x60] sm:$0xff]  ;;  %v471_v44 = vld [vmem:[#allocation7 + $0x68] sm:$0xff] }
  0x6d   :  { %621 = vmatpush3.bf16.msra.mxu0 %v254_v48  ;;  %v479_v42 = vpack.c.bf16 %v469_v41, %v468_v40  ;;  %v480_v45 = vpack.c.bf16 %v471_v44, %v470_v43  ;;  %v472_v46 = vld [vmem:[#allocation7 + $0x70] sm:$0xff]  ;;  %v473_v47 = vld [vmem:[#allocation7 + $0x78] sm:$0xff]  ;;  %v566_v51 = vld [vmem:[%s940_s2] ss:$0 sm:$0xff]  ;;  %s823_s2 = smov [#allocation8]  }
  0x6e   :  { %643 = vmatpush3.bf16.msra.mxu1 %v270_v49  ;;  %622 = vmatprep.subr.bf16.mxu0 %v263_v50  ;;  %v481_v48 = vpack.c.bf16 %v473_v47, %v472_v46  ;;  %s537_s14 = sshll.u32 %s823_s2, 4  ;;  %s538_s14 = int_to_ptr.vmem [resolvable:$true] %s537_s14 }
  0x6f   :  { %644 = vmatprep.subr.bf16.mxu1 %v279_v54  ;;  %s762_s15 = scalar_lea.vmem %s538_s14, 256  ;;  %p767_p11 = scmp.lt.s32.totalorder %s538_s14, %s538_s14 }
  0x70   :  { %p763_p10 = scmp.ne.s32.totalorder %s538_s14, %s762_s15  ;;  %p768_p12 = scmp.lt.s32.totalorder %s762_s15, %s762_s15 }
  0x71   :  { %623 = vmatpush3.bf16.msra.mxu0 %v255_v60 }
  0x72   :  { %645 = vmatpush3.bf16.msra.mxu1 %v271_v61  ;;  %624 = vmatprep.subr.bf16.mxu0 %v264_v62  ;;  %p769_p13 = por %p768_p12, %p767_p11 }
  0x73   :  { %646 = vmatprep.subr.bf16.mxu1 %v280_v2 }
  0x74   :  { %p770_p0 = pnand %p769_p13, %p763_p10 }
  0x75   :  { %625 = vmatpush3.bf16.msra.mxu0 %v256_v8 }
  0x76   :  { %647 = vmatpush3.bf16.msra.mxu1 %v272_v9  ;;  %626 = vmatprep.subr.bf16.mxu0 %v265_v10 }
  0x77   :  { %648 = vmatprep.subr.bf16.mxu1 %v281_v13 }
  0x79   :  { %627 = vmatpush3.bf16.msra.mxu0 %v257_v16 }
  0x7a   :  { %649 = vmatpush3.bf16.msra.mxu1 %v273_v19  ;;  %665 = vmatprep.subr.bf16.mxu0 %v821_v27 }
  0x7c   :  { %404 = vmatmul.mubr.bf16.vlgmr.msra.gmra.mrb[4].mxu0 %v86_v22 }
  0x7d   :  { %445 = vmatmul.mubr.bf16.vlgmr.msra.gmra.mrb[4].mxu1 %v88_v23  ;;  %666 = vmatpush3.bf16.msra.mxu0 %v474_v28 }
  0x7e   :  { %667 = vmatprep.subr.bf16.mxu0 %v821_v27  ;;  %681 = vmatprep.mubr.msk.bf16.mxu0 %vm822_vm0, %v821_v27 }
  0x81   :  { %668 = vmatpush3.bf16.msra.mxu0 %v475_v30 }
  0x82   :  { %669 = vmatprep.subr.bf16.mxu0 %v821_v27 }
  0x85   :  { %670 = vmatpush3.bf16.msra.mxu0 %v476_v33 }
  0x86   :  { %671 = vmatprep.subr.bf16.mxu0 %v821_v27 }
  0x89   :  { %672 = vmatpush3.bf16.msra.mxu0 %v477_v36 }
  0x8a   :  { %673 = vmatprep.subr.bf16.mxu0 %v821_v27 }
  0x8d   :  { %674 = vmatpush3.bf16.msra.mxu0 %v478_v39 }
  0x8e   :  { %675 = vmatprep.subr.bf16.mxu0 %v821_v27 }
  0x91   :  { %676 = vmatpush3.bf16.msra.mxu0 %v479_v42 }
  0x92   :  { %677 = vmatprep.subr.bf16.mxu0 %v821_v27 }
  0x95   :  { %678 = vmatpush3.bf16.msra.mxu0 %v480_v45 }
  0x96   :  { %679 = vmatprep.subr.bf16.mxu0 %v821_v27 }
  0x99   :  { %680 = vmatpush3.bf16.msra.mxu0 %v481_v48 }
 0x12f   :  { %v584_v49 = vpop.f32.mrb[0].mxu0 }
 0x130   :  { %v606_v50 = vpop.f32.mrb[0].mxu1  ;;  %v585_v52 = vpop.f32.mrb[1].mxu0 }
 0x131   :  { %v586_v53 = vadd.f32 %v585_v52, %v584_v49  ;;  %v607_v54 = vpop.f32.mrb[1].mxu1  ;;  %v587_v55 = vpop.f32.mrb[2].mxu0 }
 0x132   :  { %v608_v56 = vadd.f32 %v607_v54, %v606_v50  ;;  %v609_v57 = vpop.f32.mrb[2].mxu1  ;;  %v588_v58 = vpop.f32.mrb[3].mxu0 }
 0x133   :  { %v324_v59 = vadd.f32 %v586_v53, %v566_v51  ;;  %v589_v60 = vadd.f32 %v588_v58, %v587_v55  ;;  %v610_v61 = vpop.f32.mrb[3].mxu1 }
 0x134   :  { %v611_v62 = vadd.f32 %v610_v61, %v609_v57 }
 0x135   :  { %v365_v63 = vadd.f32 %v608_v56, %v324_v59  ;;  %v327_v0 = vadd.f32 %v589_v60, %v566_v51 }
 0x137   :  { %v368_v1 = vadd.f32 %v611_v62, %v327_v0 }
 0x14f   :  { %v628_v2 = vpop.f32.mrb[4].mxu0 }
 0x150   :  { %v650_v3 = vpop.f32.mrb[4].mxu1  ;;  %v629_v4 = vpop.f32.mrb[5].mxu0 }
 0x151   :  { %v630_v5 = vadd.f32 %v629_v4, %v628_v2  ;;  %v651_v6 = vpop.f32.mrb[5].mxu1  ;;  %v631_v7 = vpop.f32.mrb[6].mxu0 }
 0x152   :  { %v652_v8 = vadd.f32 %v651_v6, %v650_v3  ;;  %v653_v9 = vpop.f32.mrb[6].mxu1  ;;  %v632_v10 = vpop.f32.mrb[7].mxu0 }
 0x153   :  { %v406_v11 = vadd.f32 %v630_v5, %v365_v63  ;;  %v633_v12 = vadd.f32 %v632_v10, %v631_v7  ;;  %v654_v13 = vpop.f32.mrb[7].mxu1 }
 0x154   :  { %v655_v14 = vadd.f32 %v654_v13, %v653_v9 }
 0x155   :  { %v447_v15 = vadd.f32 %v652_v8, %v406_v11  ;;  %v409_v16 = vadd.f32 %v633_v12, %v368_v1 }
 0x157   :  { %v453_v17 = vmax.f32 %v447_v15, 0.0  ;;  %v450_v18 = vadd.f32 %v655_v14, %v409_v16 }
 0x159   :  { %455 = vst [vmem:[#allocation8] sm:$0xff] %v453_v17  ;;  %v454_v19 = vmax.f32 %v450_v18, 0.0 }
 0x15b   :  { %v457_v20 = vpack.c.bf16 %v454_v19, %v453_v17  ;;  %456 = vst [vmem:[#allocation8 + $0x8] sm:$0xff] %v454_v19 }
 0x15d   :  { %682 = vmatmul.mubr.bf16.vlgmr.msra.gmra.mrb[8].mxu0 %v457_v20 }
 0x15e   :  { %773 = shalt.err (!%p770_p0)
}
 0x15f   :  { %s774_s18 = scalar_lea.hbm %s943_s5, 256 }
 0x160   :  { %p775_p1 = scmp.ne.s32.totalorder %s943_s5, %s774_s18  ;;  %p778_p2 = scmp.lt.u32.totalorder %s774_s18, %s943_s5 }
 0x162   :  { %p780_p3 = pnand %p778_p2, %p775_p1 }
 0x164   :  { %783 = shalt.err (!%p780_p3)
}
 0x165   :  { %543 = dma.vmem_to_hbm [thread:$0]  %s538_s14, 256, %s943_s5, [#allocation4], %s815_s7, %s815_s7, %s816_s8  }
 0x166   :  { %v567_v21 = vld [vmem:[%s942_s4] ss:$0 sm:$0xff]  ;;  %s824_s26 = smov [#allocation9]  }
 0x167   :  { %s549_s27 = sshll.u32 %s824_s26, 4  ;;  %s550_s27 = int_to_ptr.vmem [resolvable:$true] %s549_s27 }
 0x168   :  { %s784_s28 = scalar_lea.vmem %s550_s27, 256  ;;  %p789_p5 = scmp.lt.s32.totalorder %s550_s27, %s550_s27 }
 0x169   :  { %p785_p4 = scmp.ne.s32.totalorder %s550_s27, %s784_s28  ;;  %p790_p6 = scmp.lt.s32.totalorder %s784_s28, %s784_s28 }
 0x16b   :  { %p791_p7 = por %p790_p6, %p789_p5 }
 0x16d   :  { %p792_p8 = pnand %p791_p7, %p785_p4 }
 0x230   :  { %v523_v22 = vpop.f32.mrb[8].mxu0 }
 0x231   :  { %v524_v23 = vadd.f32 %v567_v21, %v523_v22  ;;  %v683_v24 = vpop.f32.mrb[9].mxu0 }
 0x232   :  { %v526_v25 = vpop.f32.mrb[10].mxu0 }
 0x233   :  { %530 = vst [vmem:[#allocation9] sm:$0xff] %v524_v23  ;;  %v527_v26 = vadd.f32 %v567_v21, %v526_v25  ;;  %v684_v27 = vpop.f32.mrb[11].mxu0 }
 0x235   :  { %531 = vst [vmem:[#allocation9 + $0x8] sm:$0xff] %v527_v26 }
 0x236   :  { %795 = shalt.err (!%p792_p8)
}
 0x237   :  { %s796_s29 = scalar_lea.hbm %s944_s6, 256 }
 0x238   :  { %p797_p9 = scmp.ne.s32.totalorder %s944_s6, %s796_s29  ;;  %p800_p10 = scmp.lt.u32.totalorder %s796_s29, %s944_s6 }
 0x23a   :  { %p802_p11 = pnand %p800_p10, %p797_p9 }
 0x23c   :  { %805 = shalt.err (!%p802_p11)
}
 0x23d   :  { %555 = dma.vmem_to_hbm [thread:$0]  %s550_s27, 256, %s944_s6, [#allocation10], %s815_s7, %s815_s7, %s816_s8  }
 0x23e   :  { %810 = dma.done.wait [#allocation4], 256  }
 0x23f   :  { %811 = vsyncadd [#allocation4], 4294967040 }
 0x240   :  { %812 = dma.done.wait [#allocation10], 256  }
 0x241   :  { %813 = vsyncadd [#allocation10], 4294967040 }
 0x242   :  { %562 = vsyncpa [#allocation3], 1 }
 0x243   :  { %563 = vsyncpa [#allocation6], 1 }
 0x244   :  { %564 = vsyncpa [#allocation4], 1 }
 0x245   :  { %565 = vsyncpa [#allocation10], 1 }

</bundles_post_ra>
